<compile_context>
chip_gen: v5e
topology: v5e:2x2
jax: 0.10.0
libtpu: 0.0.40
codegen_flags: <defaults>
</compile_context>

<pallas_src>
import math
import functools

import jax
import jax.numpy as jnp
from jax.experimental import pallas as pl
from jax.experimental.pallas import tpu as pltpu

_LANES = 128
_MAX_TILE_ROWS = 1024   # 1024 * 128 * 4 B = 512 KiB per f32 block


# ----------------------------------------------------------------------------
# pe buffer construction (mirrors the torch __init__; plain-JAX glue)
# ----------------------------------------------------------------------------
def make_pe(seq_len: int, d_model: int, dtype=jnp.float32) -> jnp.ndarray:
    position = jnp.arange(seq_len, dtype=jnp.float32)[:, None]                 # (S, 1)
    divterm = jnp.exp(
        jnp.arange(0, d_model, 2, dtype=jnp.float32)
        * (-math.log(10000.0) / d_model)
    )                                                                          # (D/2,)
    args = position * divterm                                                  # (S, D/2)
    pe = jnp.zeros((seq_len, d_model), dtype=jnp.float32)
    pe = pe.at[:, 0::2].set(jnp.sin(args))
    pe = pe.at[:, 1::2].set(jnp.cos(args))
    return pe.astype(dtype)                                                    # (S, D)


# ----------------------------------------------------------------------------
# Pallas kernels (refs are (TILE_ROWS, 128) — batch dim squeezed away)
# ----------------------------------------------------------------------------
def _pe_add_kernel(x_ref, pe_ref, o_ref):
    # eval-mode forward: x + pe (dropout is identity at inference)
    o_ref[...] = (x_ref[...] + pe_ref[...]).astype(o_ref.dtype)


def _pe_add_mask_kernel(x_ref, pe_ref, m_ref, o_ref):
    # training-mode forward: (x + pe) * mask, mask already scaled by 1/keep_prob
    o_ref[...] = ((x_ref[...] + pe_ref[...]) * m_ref[...]).astype(o_ref.dtype)


# ----------------------------------------------------------------------------
# Layout helpers (glue)
# ----------------------------------------------------------------------------
def _tiling(seq_len: int, d_model: int):
    L = seq_len * d_model
    rows_raw = pl.cdiv(L, _LANES)
    tile_rows = min(_MAX_TILE_ROWS, rows_raw)      # either full extent, or 1024 (mult of 8)
    rows = pl.cdiv(rows_raw, tile_rows) * tile_rows
    return L, rows, tile_rows


def _flatten_pad(a: jnp.ndarray, lead_shape, L: int, rows: int) -> jnp.ndarray:
    flat = a.reshape(lead_shape + (L,))
    pad = rows * _LANES - L
    if pad:
        pad_width = [(0, 0)] * len(lead_shape) + [(0, pad)]
        flat = jnp.pad(flat, pad_width)
    return flat.reshape(lead_shape + (rows, _LANES))


# ----------------------------------------------------------------------------
# Forward wrapper
# ----------------------------------------------------------------------------
@functools.partial(jax.jit, static_argnames=("dropout_p", "training"))
def positional_encoding_forward(x, pe, rng_key=None, *, dropout_p=0.1,
                                training=False):
    B, S, D = x.shape
    pe_s = pe[:S].astype(x.dtype)                      # cast once on host

    L, rows, tile_rows = _tiling(S, D)
    x3 = _flatten_pad(x, (B,), L, rows)                # (B, rows, 128), lane-dense
    pe3 = _flatten_pad(pe_s, (), L, rows)              # (rows, 128)

    n_s = rows // tile_rows
    grid = (n_s, B)                                    # b inner -> pe tile reused across batch

    x_spec = pl.BlockSpec((None, tile_rows, _LANES), lambda s, b: (b, s, 0))
    pe_spec = pl.BlockSpec((tile_rows, _LANES), lambda s, b: (s, 0))
    out_spec = pl.BlockSpec((None, tile_rows, _LANES), lambda s, b: (b, s, 0))

    cp = pltpu.CompilerParams(dimension_semantics=("parallel", "parallel"))
    out_shape = jax.ShapeDtypeStruct((B, rows, _LANES), x.dtype)

    if training and dropout_p > 0.0:
        keep_prob = 1.0 - dropout_p
        keep = jax.random.bernoulli(rng_key, p=keep_prob, shape=(B, S, D))
        mask = keep.astype(x.dtype) * jnp.asarray(1.0 / keep_prob, dtype=x.dtype)
        m3 = _flatten_pad(mask, (B,), L, rows)
        y3 = pl.pallas_call(
            _pe_add_mask_kernel,
            out_shape=out_shape,
            grid=grid,
            in_specs=[x_spec, pe_spec, x_spec],
            out_specs=out_spec,
            compiler_params=cp,
        )(x3, pe3, m3)
    else:
        y3 = pl.pallas_call(
            _pe_add_kernel,
            out_shape=out_shape,
            grid=grid,
            in_specs=[x_spec, pe_spec],
            out_specs=out_spec,
            compiler_params=cp,
        )(x3, pe3)

    return y3.reshape(B, rows * _LANES)[:, :L].reshape(B, S, D)


# ----------------------------------------------------------------------------
# main
# ----------------------------------------------------------------------------
if __name__ == "__main__":
    d_model = 32
    seq_len = 8
    batch = 2
    dropout_p = 0.1

    key = jax.random.PRNGKey(0)
    kx, kd = jax.random.split(key)
    x = jax.random.normal(kx, (batch, seq_len, d_model), dtype=jnp.float32)
    pe = make_pe(seq_len, d_model, dtype=x.dtype)

    # eval mode (dropout = identity): exact check against pure-JAX reference
    y = positional_encoding_forward(x, pe, dropout_p=dropout_p, training=False)
    y = jax.block_until_ready(y)
    ref = x + pe[None, :seq_len, :]
    assert y.shape == x.shape and y.dtype == x.dtype
    assert jnp.allclose(y, ref, atol=1e-6), "eval-mode mismatch"

    # training mode (dropout active): check against same-mask reference
    y_tr = positional_encoding_forward(x, pe, kd, dropout_p=dropout_p,
                                       training=True)
    y_tr = jax.block_until_ready(y_tr)
    assert y_tr.shape == x.shape and y_tr.dtype == x.dtype
    keep_prob = 1.0 - dropout_p
    keep = jax.random.bernoulli(kd, p=keep_prob, shape=x.shape)
    mask_ref = keep.astype(x.dtype) * jnp.asarray(1.0 / keep_prob, dtype=x.dtype)
    ref_tr = ((x + pe[None, :seq_len, :]) * mask_ref).astype(x.dtype)
    assert jnp.allclose(y_tr, ref_tr, atol=1e-5), "train-mode mismatch"

    print("KERNEL_OK")
</pallas_src>

<mosaic_0001>
module attributes {stable_mosaic.version = 11 : i64} {
  func.func @_pe_add_kernel(%arg0: i32, %arg1: i32, %arg2: memref<1x2x128xf32, #tpu.memory_space<vmem>>, %arg3: memref<2x128xf32, #tpu.memory_space<vmem>>, %arg4: memref<1x2x128xf32, #tpu.memory_space<vmem>>) attributes {dimension_semantics = [#tpu.dimension_semantics<parallel>, #tpu.dimension_semantics<parallel>], iteration_bounds = array<i64: 1, 2>, scalar_prefetch = 0 : i64, scratch_operands = 0 : i64, tpu.core_type = #tpu.core_type<tc>, window_params = [{transform_indices = @transform_0, window_bounds = array<i64: 1, 2, 128>}, {transform_indices = @transform_1, window_bounds = array<i64: 2, 128>}, {transform_indices = @transform_2, window_bounds = array<i64: 1, 2, 128>}]} {
    %c0 = arith.constant 0 : index
    %c0_0 = arith.constant 0 : index
    %c0_1 = arith.constant 0 : index
    %0 = vector.load %arg2[%c0, %c0_0, %c0_1] : memref<1x2x128xf32, #tpu.memory_space<vmem>>, vector<1x2x128xf32>
    %1 = vector.shape_cast %0 : vector<1x2x128xf32> to vector<2x128xf32>
    %c0_2 = arith.constant 0 : index
    %c0_3 = arith.constant 0 : index
    %2 = vector.load %arg3[%c0_2, %c0_3] : memref<2x128xf32, #tpu.memory_space<vmem>>, vector<2x128xf32>
    %3 = arith.addf %1, %2 : vector<2x128xf32>
    %c0_4 = arith.constant 0 : index
    %c0_5 = arith.constant 0 : index
    %c0_6 = arith.constant 0 : index
    %4 = vector.load %arg4[%c0_4, %c0_5, %c0_6] : memref<1x2x128xf32, #tpu.memory_space<vmem>>, vector<1x2x128xf32>
    %5 = vector.shape_cast %4 : vector<1x2x128xf32> to vector<2x128xf32>
    %6 = vector.shape_cast %3 : vector<2x128xf32> to vector<1x2x128xf32>
    tpu.vector_store %arg4[%c0_4, %c0_5, %c0_6], %6 {strides = array<i32>} : memref<1x2x128xf32, #tpu.memory_space<vmem>>, vector<1x2x128xf32>,
    return
  }
  func.func @transform_0(%arg0: i32, %arg1: i32) -> (i32, i32, i32) {
    %c0_i32 = arith.constant 0 : i32
    %c0_i32_0 = arith.constant 0 : i32
    return %arg1, %arg0, %c0_i32 : i32, i32, i32
  }
  func.func @transform_1(%arg0: i32, %arg1: i32) -> (i32, i32) {
    %c0_i32 = arith.constant 0 : i32
    %c0_i32_0 = arith.constant 0 : i32
    return %arg0, %c0_i32 : i32, i32
  }
  func.func @transform_2(%arg0: i32, %arg1: i32) -> (i32, i32, i32) {
    %c0_i32 = arith.constant 0 : i32
    %c0_i32_0 = arith.constant 0 : i32
    return %arg1, %arg0, %c0_i32 : i32, i32, i32
  }
}

</mosaic_0001>

<bundles_post_ra>
// kernel: positional_encoding_forward.1
= control target key start
LH: loop header
LB: loop body
LE: loop exit
PB: predicated region body
PF: predicated region fallthrough
CT: control target
= control target key end

     0   :  { %s354_s9 = smov 0   ;;  %s331_s10 = smov 0   ;;  %s368_s0 = inlined_call_operand.vmem [shape: f32[2,2,128], index: 0, kind: input, shape index: {}]   ;;  %s369_s1 = inlined_call_operand.vmem [shape: f32[2,128], index: 1, kind: input, shape index: {}]   ;;  %s370_s2 = inlined_call_operand.vmem [shape: f32[2,2,128], index: 2, kind: output, shape index: {}]  }
   0x1   :  { %s335_s11 = smov 0  }
   0x2 LB: > { %s21_s12 = sadd.s32 1, %s333_s10  ;;  %p286_p0 = scmp.ge.s32.totalorder %s337_s11, 1  ;;  %s337_s11 = sphi %s335_s11, %s12_s11   ;;  %s333_s10 = sphi %s331_s10, %s332_s10   ;;  %s329_s9 = sphi %s354_s9, %s371_s9  }
   0x3   : > { %p22_p1 = scmp.ge.s32.totalorder %s21_s12, 2  ;;  %p139_p2 = scmp.lt.s32.totalorder %s337_s11, 3 }
   0x5   : > { %s373_s12 = smov (%p22_p1, %s21_s12), 0  ;;  %p140_p3 = pnand %p286_p0, %p139_p2 }
   0x6   : > { %p169_p4 = scmp.lt.s32.totalorder (!%p140_p3), %s329_s9, 1 }
   0x7   : > { %143 = sbr.rel (%p140_p3) target bundleno = 19 (0x13), region = 28 }
   0xc   : > { %s375_s9 = smov (!%p169_p4, %s329_s9), 1  ;;  %v188_v0 = vld [vmem:[%s369_s1] sm:$0x3] }
   0xd   : > { %s287_s13 = sshll.u32 %s375_s9, 1 }
   0xe   : > { %s175_s18 = scalar_lea.vmem %s368_s0, %s287_s13  ;;  %s186_s21 = scalar_lea.vmem %s370_s2, %s287_s13 }
   0xf   : > { %v187_v1 = vld [vmem:[%s175_s18] sm:$0x3] }
  0x10   : > { %v189_v2 = vadd.f32 %v188_v0, %v187_v1 }
  0x12   : > { %190 = vst [vmem:[%s186_s21] sm:$0x3] %v189_v2 }
  0x13 PF: > { %s12_s11 = sadd.s32 1, %s337_s11   ;;  %s371_s9 = smov %s333_s10 }
  0x14   : > { %p9_p5 = scmp.ge.s32.totalorder %s12_s11, 4   ;;  %s332_s10 = smov %s373_s12  }
  0x16   :  { %11 = sbr.rel (!%p9_p5) target bundleno = 2 (0x2), region = 61 }

</bundles_post_ra>
